<compile_context>
chip_gen: v7x
topology: tpu7x:2x2x1
jax: 0.10.0
libtpu: 0.0.40
codegen_flags: <defaults>
</compile_context>

<pallas_src>
import functools
import math

import jax
import jax.numpy as jnp
from jax import lax
from jax.experimental import pallas as pl
from jax.experimental.pallas import tpu as pltpu

_MASK_VALUE = -1e30  # large finite negative (NaN-safe vs -inf)


def _fused_mha_kernel(x_ref, w_ref, o_ref, *, num_heads, d_out):
    # Block shapes:
    #   x_ref : (1, T, d_in)        -- one batch element
    #   w_ref : (d_in, 3*H*d_out)   -- fused [Q_all_heads | K_all_heads | V_all_heads]
    #   o_ref : (1, T, H*d_out)     -- concatenated per-head outputs
    x = x_ref[0].astype(jnp.bfloat16)       # (T, d_in)
    w = w_ref[...].astype(jnp.bfloat16)     # (d_in, 3*H*d_out)

    # One lane-dense bf16 MXU matmul for every head's Q, K and V at once (f32 acc).
    qkv = jnp.dot(x, w, preferred_element_type=jnp.float32)   # (T, 3*H*d_out)

    hd = num_heads * d_out
    scale = 1.0 / math.sqrt(d_out)
    # Fold the softmax scale into q (T x H*d_out) instead of scaling T x T scores.
    q_all = (qkv[:, :hd] * scale).astype(jnp.bfloat16)
    k_all = qkv[:, hd:2 * hd].astype(jnp.bfloat16)
    v_all = qkv[:, 2 * hd:].astype(jnp.bfloat16)

    T = x.shape[0]
    row = lax.broadcasted_iota(jnp.int32, (T, T), 0)
    col = lax.broadcasted_iota(jnp.int32, (T, T), 1)
    causal_mask = col > row  # True where masked (strict upper triangle)

    ctx_heads = []
    for h in range(num_heads):  # unrolled; H is small and static
        lo, hi = h * d_out, (h + 1) * d_out
        q = q_all[:, lo:hi]
        k = k_all[:, lo:hi]
        v = v_all[:, lo:hi]

        # scores = q @ k^T without materializing k.T (contract shared d_out axis).
        scores = lax.dot_general(
            q, k,
            dimension_numbers=(((1,), (1,)), ((), ())),
            preferred_element_type=jnp.float32)                # (T, T) f32
        scores = jnp.where(causal_mask, _MASK_VALUE, scores)

        # Numerically-stable softmax in f32.
        scores = scores - jnp.max(scores, axis=-1, keepdims=True)
        p = jnp.exp(scores)
        denom = jnp.sum(p, axis=-1, keepdims=True)
        attn = p * pl.reciprocal(denom, approx=True)

        ctx = jnp.dot(attn.astype(jnp.bfloat16), v,
                      preferred_element_type=jnp.float32)      # (T, d_out)
        ctx_heads.append(ctx)

    # Single lane-dense store of the concatenated result (matches torch.cat(dim=-1)).
    o_ref[0] = jnp.concatenate(ctx_heads, axis=-1).astype(o_ref.dtype)


def multi_head_attention(x, wq, wk, wv):
    """x: (B, T, d_in); wq/wk/wv: (H, d_in, d_out). Returns (B, T, H*d_out)."""
    B, T, d_in = x.shape
    H, _, d_out = wq.shape

    # Fuse all heads and Q/K/V into one (d_in, 3*H*d_out) projection matrix:
    #   columns are [Q_head0 .. Q_headH-1 | K_head0 .. K_headH-1 | V_head0 .. V_headH-1].
    def _stack(w):  # (H, d_in, d_out) -> (d_in, H*d_out)
        return w.transpose(1, 0, 2).reshape(d_in, H * d_out)

    w_qkv = jnp.concatenate([_stack(wq), _stack(wk), _stack(wv)], axis=-1)

    kernel = functools.partial(_fused_mha_kernel, num_heads=H, d_out=d_out)

    return pl.pallas_call(
        kernel,
        out_shape=jax.ShapeDtypeStruct((B, T, H * d_out), x.dtype),
        grid_spec=pltpu.PrefetchScalarGridSpec(
            num_scalar_prefetch=0,
            grid=(B,),
            in_specs=[
                pl.BlockSpec((1, T, d_in), lambda b: (b, 0, 0)),
                pl.BlockSpec((d_in, 3 * H * d_out), lambda b: (0, 0)),
            ],
            out_specs=pl.BlockSpec((1, T, H * d_out), lambda b: (b, 0, 0)),
        ),
        compiler_params=pltpu.CompilerParams(
            # Batch axis is genuinely parallel (shards across v7x's 2 TensorCores;
            # harmless no-op on v5e/v6e).
            dimension_semantics=("parallel",),
        ),
    )(x, w_qkv)


def reference_mha(x, wq, wk, wv):
    """Pure-JAX f32 reference matching CasualAttention/MultiHeadAttentionWrapper."""
    B, T, d_in = x.shape
    H, _, d_out = wq.shape
    outs = []
    mask = jnp.triu(jnp.ones((T, T), dtype=bool), k=1)
    for h in range(H):
        q = x @ wq[h]
        k = x @ wk[h]
        v = x @ wv[h]
        scores = jnp.einsum("btd,bsd->bts", q, k)
        scores = jnp.where(mask[None], -jnp.inf, scores)
        w = jax.nn.softmax(scores / math.sqrt(d_out), axis=-1)
        outs.append(jnp.einsum("bts,bsd->btd", w, v))
    return jnp.concatenate(outs, axis=-1)


if __name__ == "__main__":
    # Small, deterministic configuration.
    B, T = 2, 8           # batch, num_tokens (== context_length)
    d_in, d_out = 32, 16  # per-head input / output dims
    H = 4                 # num_heads
    dropout = 0.0         # eval-mode dropout is identity anyway

    key = jax.random.PRNGKey(0)
    kx, kq, kk, kv = jax.random.split(key, 4)

    x = jax.random.normal(kx, (B, T, d_in), dtype=jnp.float32)
    # nn.Linear(d_in, d_out) weight is (d_out, d_in); we store (d_in, d_out) = W.T
    # with a deterministic kaiming-uniform-like init (bound = 1/sqrt(d_in)).
    bound = 1.0 / math.sqrt(d_in)
    wq = jax.random.uniform(kq, (H, d_in, d_out), jnp.float32, -bound, bound)
    wk = jax.random.uniform(kk, (H, d_in, d_out), jnp.float32, -bound, bound)
    wv = jax.random.uniform(kv, (H, d_in, d_out), jnp.float32, -bound, bound)

    out = multi_head_attention(x, wq, wk, wv)
    out = jax.block_until_ready(out)

    ref = reference_mha(x, wq, wk, wv)
    assert out.shape == (B, T, H * d_out), out.shape
    # bf16 MXU operands (f32 accumulation / f32 softmax) -> relaxed tolerance vs f32 ref.
    max_err = float(jnp.max(jnp.abs(out - ref)))
    assert jnp.allclose(out, ref, atol=5e-2, rtol=5e-2), max_err

    print("KERNEL_OK")
</pallas_src>

<mosaic_0001>
module attributes {stable_mosaic.version = 11 : i64} {
  func.func @_fused_mha_kernel(%arg0: i32, %arg1: memref<1x8x32xf32, #tpu.memory_space<vmem>>, %arg2: memref<32x192xf32, #tpu.memory_space<vmem>>, %arg3: memref<1x8x64xf32, #tpu.memory_space<vmem>>) attributes {dimension_semantics = [#tpu.dimension_semantics<parallel>], iteration_bounds = array<i64: 2>, scalar_prefetch = 0 : i64, scratch_operands = 0 : i64, tpu.core_type = #tpu.core_type<tc>, window_params = [{transform_indices = @transform_0, window_bounds = array<i64: 1, 8, 32>}, {pipeline_mode = #tpu.pipeline_mode<synchronous>, transform_indices = @transform_1, window_bounds = array<i64: 32, 192>}, {transform_indices = @transform_2, window_bounds = array<i64: 1, 8, 64>}]} {
    %c0 = arith.constant 0 : index
    %c0_0 = arith.constant 0 : index
    %c0_1 = arith.constant 0 : index
    %0 = vector.load %arg1[%c0, %c0_0, %c0_1] : memref<1x8x32xf32, #tpu.memory_space<vmem>>, vector<1x8x32xf32>
    %1 = vector.shape_cast %0 : vector<1x8x32xf32> to vector<8x32xf32>
    %2 = arith.truncf %1 : vector<8x32xf32> to vector<8x32xbf16>
    %c0_2 = arith.constant 0 : index
    %c0_3 = arith.constant 0 : index
    %3 = vector.load %arg2[%c0_2, %c0_3] : memref<32x192xf32, #tpu.memory_space<vmem>>, vector<32x192xf32>
    %4 = arith.truncf %3 : vector<32x192xf32> to vector<32x192xbf16>
    %cst = arith.constant dense<0.000000e+00> : vector<8x192xf32>
    %5 = tpu.matmul %2, %4, %cst {dimension_numbers = #tpu.dot_dimension_numbers<[1], [0], [0], [1], [0, 0, 1, 1], [], []>} : vector<8x32xbf16>, vector<32x192xbf16>, vector<8x192xf32> -> vector<8x192xf32>
    %6 = vector.extract_strided_slice %5 {offsets = [0, 0], sizes = [8, 64], strides = [1, 1]} : vector<8x192xf32> to vector<8x64xf32>
    %cst_4 = arith.constant 2.500000e-01 : f32
    %7 = vector.broadcast %cst_4 : f32 to vector<8x64xf32>
    %8 = arith.mulf %6, %7 : vector<8x64xf32>
    %9 = arith.truncf %8 : vector<8x64xf32> to vector<8x64xbf16>
    %10 = vector.extract_strided_slice %5 {offsets = [0, 64], sizes = [8, 64], strides = [1, 1]} : vector<8x192xf32> to vector<8x64xf32>
    %11 = arith.truncf %10 : vector<8x64xf32> to vector<8x64xbf16>
    %12 = vector.extract_strided_slice %5 {offsets = [0, 128], sizes = [8, 64], strides = [1, 1]} : vector<8x192xf32> to vector<8x64xf32>
    %13 = arith.truncf %12 : vector<8x64xf32> to vector<8x64xbf16>
    %14 = tpu.iota {dimensions = array<i32: 0>} : vector<8x8xi32>
    %15 = tpu.iota {dimensions = array<i32: 1>} : vector<8x8xi32>
    %16 = arith.cmpi sgt, %15, %14 : vector<8x8xi32>
    %17 = vector.extract_strided_slice %9 {offsets = [0, 0], sizes = [8, 16], strides = [1, 1]} : vector<8x64xbf16> to vector<8x16xbf16>
    %18 = vector.extract_strided_slice %11 {offsets = [0, 0], sizes = [8, 16], strides = [1, 1]} : vector<8x64xbf16> to vector<8x16xbf16>
    %19 = vector.extract_strided_slice %13 {offsets = [0, 0], sizes = [8, 16], strides = [1, 1]} : vector<8x64xbf16> to vector<8x16xbf16>
    %cst_5 = arith.constant dense<0.000000e+00> : vector<8x8xf32>
    %20 = tpu.matmul %17, %18, %cst_5 {dimension_numbers = #tpu.dot_dimension_numbers<[1], [1], [0], [0], [0, 0, 1, 0], [], []>} : vector<8x16xbf16>, vector<8x16xbf16>, vector<8x8xf32> -> vector<8x8xf32>
    %cst_6 = arith.constant -1.000000e+30 : f32
    %21 = vector.broadcast %cst_6 : f32 to vector<8x8xf32>
    %22 = arith.select %16, %21, %20 : vector<8x8xi1>, vector<8x8xf32>
    %cst_7 = arith.constant dense<0xFF800000> : vector<8xf32>
    %23 = vector.multi_reduction <maximumf>, %22, %cst_7 [1] : vector<8x8xf32> to vector<8xf32>
    %24 = vector.shape_cast %23 : vector<8xf32> to vector<8x1xf32>
    %25 = vector.broadcast %24 : vector<8x1xf32> to vector<8x8xf32>
    %26 = arith.subf %22, %25 : vector<8x8xf32>
    %27 = math.exp %26 : vector<8x8xf32>
    %cst_8 = arith.constant dense<0.000000e+00> : vector<8xf32>
    %28 = vector.multi_reduction <add>, %27, %cst_8 [1] : vector<8x8xf32> to vector<8xf32>
    %29 = vector.shape_cast %28 : vector<8xf32> to vector<8x1xf32>
    %30 = tpu.reciprocal %29 {approx = true} : vector<8x1xf32> -> vector<8x1xf32>
    %31 = vector.broadcast %30 : vector<8x1xf32> to vector<8x8xf32>
    %32 = arith.mulf %27, %31 : vector<8x8xf32>
    %33 = arith.truncf %32 : vector<8x8xf32> to vector<8x8xbf16>
    %cst_9 = arith.constant dense<0.000000e+00> : vector<8x16xf32>
    %34 = tpu.matmul %33, %19, %cst_9 {dimension_numbers = #tpu.dot_dimension_numbers<[1], [0], [0], [1], [0, 0, 1, 1], [], []>} : vector<8x8xbf16>, vector<8x16xbf16>, vector<8x16xf32> -> vector<8x16xf32>
    %35 = vector.extract_strided_slice %9 {offsets = [0, 16], sizes = [8, 16], strides = [1, 1]} : vector<8x64xbf16> to vector<8x16xbf16>
    %36 = vector.extract_strided_slice %11 {offsets = [0, 16], sizes = [8, 16], strides = [1, 1]} : vector<8x64xbf16> to vector<8x16xbf16>
    %37 = vector.extract_strided_slice %13 {offsets = [0, 16], sizes = [8, 16], strides = [1, 1]} : vector<8x64xbf16> to vector<8x16xbf16>
    %cst_10 = arith.constant dense<0.000000e+00> : vector<8x8xf32>
    %38 = tpu.matmul %35, %36, %cst_10 {dimension_numbers = #tpu.dot_dimension_numbers<[1], [1], [0], [0], [0, 0, 1, 0], [], []>} : vector<8x16xbf16>, vector<8x16xbf16>, vector<8x8xf32> -> vector<8x8xf32>
    %cst_11 = arith.constant -1.000000e+30 : f32
    %39 = vector.broadcast %cst_11 : f32 to vector<8x8xf32>
    %40 = arith.select %16, %39, %38 : vector<8x8xi1>, vector<8x8xf32>
    %cst_12 = arith.constant dense<0xFF800000> : vector<8xf32>
    %41 = vector.multi_reduction <maximumf>, %40, %cst_12 [1] : vector<8x8xf32> to vector<8xf32>
    %42 = vector.shape_cast %41 : vector<8xf32> to vector<8x1xf32>
    %43 = vector.broadcast %42 : vector<8x1xf32> to vector<8x8xf32>
    %44 = arith.subf %40, %43 : vector<8x8xf32>
    %45 = math.exp %44 : vector<8x8xf32>
    %cst_13 = arith.constant dense<0.000000e+00> : vector<8xf32>
    %46 = vector.multi_reduction <add>, %45, %cst_13 [1] : vector<8x8xf32> to vector<8xf32>
    %47 = vector.shape_cast %46 : vector<8xf32> to vector<8x1xf32>
    %48 = tpu.reciprocal %47 {approx = true} : vector<8x1xf32> -> vector<8x1xf32>
    %49 = vector.broadcast %48 : vector<8x1xf32> to vector<8x8xf32>
    %50 = arith.mulf %45, %49 : vector<8x8xf32>
    %51 = arith.truncf %50 : vector<8x8xf32> to vector<8x8xbf16>
    %cst_14 = arith.constant dense<0.000000e+00> : vector<8x16xf32>
    %52 = tpu.matmul %51, %37, %cst_14 {dimension_numbers = #tpu.dot_dimension_numbers<[1], [0], [0], [1], [0, 0, 1, 1], [], []>} : vector<8x8xbf16>, vector<8x16xbf16>, vector<8x16xf32> -> vector<8x16xf32>
    %53 = vector.extract_strided_slice %9 {offsets = [0, 32], sizes = [8, 16], strides = [1, 1]} : vector<8x64xbf16> to vector<8x16xbf16>
    %54 = vector.extract_strided_slice %11 {offsets = [0, 32], sizes = [8, 16], strides = [1, 1]} : vector<8x64xbf16> to vector<8x16xbf16>
    %55 = vector.extract_strided_slice %13 {offsets = [0, 32], sizes = [8, 16], strides = [1, 1]} : vector<8x64xbf16> to vector<8x16xbf16>
    %cst_15 = arith.constant dense<0.000000e+00> : vector<8x8xf32>
    %56 = tpu.matmul %53, %54, %cst_15 {dimension_numbers = #tpu.dot_dimension_numbers<[1], [1], [0], [0], [0, 0, 1, 0], [], []>} : vector<8x16xbf16>, vector<8x16xbf16>, vector<8x8xf32> -> vector<8x8xf32>
    %cst_16 = arith.constant -1.000000e+30 : f32
    %57 = vector.broadcast %cst_16 : f32 to vector<8x8xf32>
    %58 = arith.select %16, %57, %56 : vector<8x8xi1>, vector<8x8xf32>
    %cst_17 = arith.constant dense<0xFF800000> : vector<8xf32>
    %59 = vector.multi_reduction <maximumf>, %58, %cst_17 [1] : vector<8x8xf32> to vector<8xf32>
    %60 = vector.shape_cast %59 : vector<8xf32> to vector<8x1xf32>
    %61 = vector.broadcast %60 : vector<8x1xf32> to vector<8x8xf32>
    %62 = arith.subf %58, %61 : vector<8x8xf32>
    %63 = math.exp %62 : vector<8x8xf32>
    %cst_18 = arith.constant dense<0.000000e+00> : vector<8xf32>
    %64 = vector.multi_reduction <add>, %63, %cst_18 [1] : vector<8x8xf32> to vector<8xf32>
    %65 = vector.shape_cast %64 : vector<8xf32> to vector<8x1xf32>
    %66 = tpu.reciprocal %65 {approx = true} : vector<8x1xf32> -> vector<8x1xf32>
    %67 = vector.broadcast %66 : vector<8x1xf32> to vector<8x8xf32>
    %68 = arith.mulf %63, %67 : vector<8x8xf32>
    %69 = arith.truncf %68 : vector<8x8xf32> to vector<8x8xbf16>
    %cst_19 = arith.constant dense<0.000000e+00> : vector<8x16xf32>
    %70 = tpu.matmul %69, %55, %cst_19 {dimension_numbers = #tpu.dot_dimension_numbers<[1], [0], [0], [1], [0, 0, 1, 1], [], []>} : vector<8x8xbf16>, vector<8x16xbf16>, vector<8x16xf32> -> vector<8x16xf32>
    %71 = vector.extract_strided_slice %9 {offsets = [0, 48], sizes = [8, 16], strides = [1, 1]} : vector<8x64xbf16> to vector<8x16xbf16>
    %72 = vector.extract_strided_slice %11 {offsets = [0, 48], sizes = [8, 16], strides = [1, 1]} : vector<8x64xbf16> to vector<8x16xbf16>
    %73 = vector.extract_strided_slice %13 {offsets = [0, 48], sizes = [8, 16], strides = [1, 1]} : vector<8x64xbf16> to vector<8x16xbf16>
    %cst_20 = arith.constant dense<0.000000e+00> : vector<8x8xf32>
    %74 = tpu.matmul %71, %72, %cst_20 {dimension_numbers = #tpu.dot_dimension_numbers<[1], [1], [0], [0], [0, 0, 1, 0], [], []>} : vector<8x16xbf16>, vector<8x16xbf16>, vector<8x8xf32> -> vector<8x8xf32>
    %cst_21 = arith.constant -1.000000e+30 : f32
    %75 = vector.broadcast %cst_21 : f32 to vector<8x8xf32>
    %76 = arith.select %16, %75, %74 : vector<8x8xi1>, vector<8x8xf32>
    %cst_22 = arith.constant dense<0xFF800000> : vector<8xf32>
    %77 = vector.multi_reduction <maximumf>, %76, %cst_22 [1] : vector<8x8xf32> to vector<8xf32>
    %78 = vector.shape_cast %77 : vector<8xf32> to vector<8x1xf32>
    %79 = vector.broadcast %78 : vector<8x1xf32> to vector<8x8xf32>
    %80 = arith.subf %76, %79 : vector<8x8xf32>
    %81 = math.exp %80 : vector<8x8xf32>
    %cst_23 = arith.constant dense<0.000000e+00> : vector<8xf32>
    %82 = vector.multi_reduction <add>, %81, %cst_23 [1] : vector<8x8xf32> to vector<8xf32>
    %83 = vector.shape_cast %82 : vector<8xf32> to vector<8x1xf32>
    %84 = tpu.reciprocal %83 {approx = true} : vector<8x1xf32> -> vector<8x1xf32>
    %85 = vector.broadcast %84 : vector<8x1xf32> to vector<8x8xf32>
    %86 = arith.mulf %81, %85 : vector<8x8xf32>
    %87 = arith.truncf %86 : vector<8x8xf32> to vector<8x8xbf16>
    %cst_24 = arith.constant dense<0.000000e+00> : vector<8x16xf32>
    %88 = tpu.matmul %87, %73, %cst_24 {dimension_numbers = #tpu.dot_dimension_numbers<[1], [0], [0], [1], [0, 0, 1, 1], [], []>} : vector<8x8xbf16>, vector<8x16xbf16>, vector<8x16xf32> -> vector<8x16xf32>
    %89 = tpu.concatenate %34, %52, %70, %88 in 1 : vector<8x16xf32>, vector<8x16xf32>, vector<8x16xf32>, vector<8x16xf32> -> vector<8x64xf32>
    %c0_25 = arith.constant 0 : index
    %c0_26 = arith.constant 0 : index
    %c0_27 = arith.constant 0 : index
    %90 = vector.load %arg3[%c0_25, %c0_26, %c0_27] : memref<1x8x64xf32, #tpu.memory_space<vmem>>, vector<1x8x64xf32>
    %91 = vector.shape_cast %90 : vector<1x8x64xf32> to vector<8x64xf32>
    %92 = vector.shape_cast %89 : vector<8x64xf32> to vector<1x8x64xf32>
    tpu.vector_store %arg3[%c0_25, %c0_26, %c0_27], %92 {strides = array<i32>} : memref<1x8x64xf32, #tpu.memory_space<vmem>>, vector<1x8x64xf32>,
    return
  }
  func.func @transform_0(%arg0: i32) -> (i32, i32, i32) {
    %c0_i32 = arith.constant 0 : i32
    %c0_i32_0 = arith.constant 0 : i32
    %c0_i32_1 = arith.constant 0 : i32
    return %arg0, %c0_i32, %c0_i32_0 : i32, i32, i32
  }
  func.func @transform_1(%arg0: i32) -> (i32, i32) {
    %c0_i32 = arith.constant 0 : i32
    %c0_i32_0 = arith.constant 0 : i32
    %c0_i32_1 = arith.constant 0 : i32
    return %c0_i32, %c0_i32_0 : i32, i32
  }
  func.func @transform_2(%arg0: i32) -> (i32, i32, i32) {
    %c0_i32 = arith.constant 0 : i32
    %c0_i32_0 = arith.constant 0 : i32
    %c0_i32_1 = arith.constant 0 : i32
    return %arg0, %c0_i32, %c0_i32_0 : i32, i32, i32
  }
}

</mosaic_0001>

<bundles_post_ra>
// kernel: tpu_custom_call.1
= control target key start
LH: loop header
LB: loop body
LE: loop exit
PB: predicated region body
PF: predicated region fallthrough
CT: control target
= control target key end

     0   :  { %7 = vsyncpa [#allocation3], 0  ;;  %s1406_s0 = inlined_call_operand.hbm [shape: f32[2,8,32], index: 0, kind: input, shape index: {}]   ;;  %s1407_s1 = inlined_call_operand.hbm [shape: f32[32,192], index: 1, kind: input, shape index: {}]   ;;  %s1408_s2 = inlined_call_operand.hbm [shape: f32[2,8,64], index: 2, kind: output, shape index: {}]  }
   0x1   :  { %9 = vsyncpa [#allocation3 + $0x1], 0 }
   0x2   :  { %10 = vsyncpa [#allocation6], 0 }
   0x3   :  { %11 = vsyncpa [#allocation4], 0 }
   0x4   :  { %13 = vsyncpa [#allocation4 + $0x1], 0  ;;  %s1133_s9 = smov 0   ;;  %s1135_s10 = smov 0  }
   0x5   :  { %s1137_s11 = smov 0   ;;  %s1139_s12 = smov 0  }
   0x6 LB: > { %s1154_s13 = sadd.s32 4294967295, %s1101_s12   ;;  %s801_s14 = sadd.s32 4294967294, %s1101_s12   ;;  %s1101_s12 = sphi %s1139_s12, %s1428_s12   ;;  %s1097_s11 = sphi %s1137_s11, %s1427_s11   ;;  %s1093_s10 = sphi %s1135_s10, %s1426_s10   ;;  %s1089_s9 = sphi %s1133_s9, %s1425_s9  }
   0x7   : > { %p39_p0 = scmp.ne.s32.totalorder %s1093_s10, %s1089_s9  ;;  %p1409_p1 = scmp.eq.s32.totalorder %s1154_s13, 0 }
   0x8   : > { %p90_p3 = scmp.eq.s32.totalorder %s801_s14, 1  ;;  %p802_p5 = scmp.ge.s32.totalorder %s1101_s12, 1 }
   0x9   : > { %p1163_p4 = por %p1409_p1, %p39_p0  ;;  %p97_p7 = scmp.lt.s32.totalorder %s1101_s12, 3 }
   0xa   : > { %p1168_p6 = por %p90_p3, %p39_p0  ;;  %s1103_s18 = smov [#allocation5]  }
   0xb   : > { %s1412_s15 = scalar_select %p1163_p4, 1, 0 }
   0xc   : > { %s1413_s16 = scalar_select %p1168_p6, 1, 0 }
   0xd   : > { %p1173_p8 = pnand %p802_p5, %p97_p7  ;;  %s109_s19 = sshll.u32 %s1103_s18, 4  ;;  %s1177_s19 = int_to_ptr.vmem [resolvable:$true] %s109_s19 }
   0xe   : > { %s1189_s21 = sadd.s32 1, %s1101_s12   ;;  %s26_s22 = sadd.s32 1, %s1097_s11 }
   0xf   : > { %s1414_s17 = scalar_select %p1173_p8, 1, 0 }
  0x10   : > { %p896_p9 = pneg %p1173_p8  ;;  %s23_s23 = ssub.s32 %s1101_s12, %s1189_s21 }
  0x11   : > { %s973_s26 = scalar_lea.hbm %s1407_s1, 1024 }
  0x12   : > { %p1184_p11 = pnand %p896_p9, %p1409_p1  ;;  %p974_p12 = scmp.ne.s32.totalorder %s1407_s1, %s973_s26 }
  0x13   : > { %p980_p5 = scmp.lt.u32.totalorder %s973_s26, %s1407_s1 }
  0x14   : > { %p975_p13 = pneg %p1184_p11 }
  0x16   : > { %p976_p0 = pnand %p975_p13, %p974_p12 }
  0x18   : > { %p977_p3 = pneg %p976_p0 }
  0x1a   : > { %p982_p7 = pnand %p980_p5, %p977_p3 }
  0x1c   : > { %985 = shalt.err (!%p982_p7)
}
  0x1d   : > { %s986_s3 = scalar_lea.vmem %s1177_s19, 1024  ;;  %p994_p2 = scmp.lt.s32.totalorder %s1177_s19, %s1177_s19 }
  0x1e   : > { %p987_p9 = scmp.ne.s32.totalorder %s1177_s19, %s986_s3  ;;  %p995_p6 = scmp.lt.s32.totalorder %s986_s3, %s986_s3 }
  0x20   : > { %p989_p10 = pnand %p987_p9, %p975_p13  ;;  %p996_p4 = por %p995_p6, %p994_p2 }
  0x22   : > { %p990_p1 = pneg %p989_p10 }
  0x24   : > { %p997_p8 = pnand %p996_p4, %p990_p1 }
  0x26   : > { %1000 = shalt.err (!%p997_p8)
}
  0x27   : > { %s1104_s4 = smov 256   ;;  %s1105_s5 = smov 16  }
  0x28   : > { %899 = dma.hbm_to_vmem [thread:$0]  (!%p1184_p11), %s1407_s1, 1024, %s1177_s19, [#allocation6], %s1104_s4, %s1104_s4, %s1105_s5  }
  0x29   : > { %p24_p2 = scmp.eq.s32.totalorder %s23_s23, 0  ;;  %p33_p1 = scmp.ne.s32.totalorder %s1097_s11, %s1093_s10 }
  0x2a   : > { %p34_p4 = scmp.eq.s32.totalorder %s1101_s12, 0  ;;  %p909_p6 = scmp.lt.s32.totalorder %s1101_s12, 2 }
  0x2b   : > { %s1220_s8 = scalar_select %p24_p2, %s1097_s11, %s26_s22  }
  0x2c   : > { %p35_p8 = por %p34_p4, %p33_p1  ;;  %p1416_p10 = scmp.eq.s32.totalorder %s1154_s13, 1 }
  0x2d   : > { %s123_s18 = sand.u32 1, %s1097_s11   ;;  %s806_s24 = sshll.u32 %s1101_s12, 7 }
  0x2e   : > { %p1224_p12 = por %p1416_p10, %p33_p1  ;;  %s805_s25 = sshll.u32 %s123_s18, 3 }
  0x2f   : > { %s1233_s27 = scalar_lea.hbm %s1406_s0, %s806_s24  ;;  %s127_s19 = scalar_lea.vmem [#allocation2], %s805_s25 }
  0x30   : > { %s134_s22 = sshll.u32 %s127_s19, 4  ;;  %p1235_p11 = pnand %p909_p6, %p35_p8  ;;  %s1239_s22 = int_to_ptr.vmem [resolvable:$true] %s134_s22 }
  0x31   : > { %s124_s28 = scalar_lea.sflag [#allocation3], %s123_s18  ;;  %s1001_s29 = scalar_lea.hbm %s1233_s27, 128 }
  0x32   : > { %p1002_p13 = scmp.ne.s32.totalorder %s1233_s27, %s1001_s29  ;;  %p1003_p0 = pneg %p1235_p11 }
  0x33   : > { %s1006_s4 = scalar_lea.hbm %s1406_s0, 256  ;;  %p1007_p7 = scmp.lt.u32.totalorder %s1233_s27, %s1406_s0 }
  0x34   : > { %p1004_p3 = pnand %p1003_p0, %p1002_p13  ;;  %p1008_p9 = scmp.lt.u32.totalorder %s1006_s4, %s1001_s29 }
  0x35   : > { %p1010_p1 = scmp.lt.u32.totalorder %s1001_s29, %s1233_s27 }
  0x36   : > { %p1005_p5 = pneg %p1004_p3  ;;  %p1009_p2 = por %p1008_p9, %p1007_p7 }
  0x38   : > { %p1011_p4 = por %p1010_p1, %p1009_p2 }
  0x3a   : > { %p1012_p6 = pnand %p1011_p4, %p1005_p5 }
  0x3c   : > { %1015 = shalt.err (!%p1012_p6)
}
  0x3d   : > { %s1016_s7 = scalar_lea.vmem %s1239_s22, 128  ;;  %s1106_s18 = smov [#allocation2]  }
  0x3e   : > { %p1017_p8 = scmp.ne.s32.totalorder %s1239_s22, %s1016_s7  ;;  %s1021_s24 = sshll.u32 %s1106_s18, 4  ;;  %s1022_s24 = int_to_ptr.vmem [resolvable:$false] %s1021_s24 }
  0x3f   : > { %s1023_s25 = scalar_lea.vmem %s1022_s24, 256  ;;  %p1024_p3 = scmp.lt.s32.totalorder %s1239_s22, %s1022_s24 }
  0x40   : > { %p1019_p10 = pnand %p1017_p8, %p1003_p0  ;;  %p1025_p7 = scmp.lt.s32.totalorder %s1023_s25, %s1016_s7 }
  0x42   : > { %p1020_p13 = pneg %p1019_p10  ;;  %p1026_p9 = por %p1025_p7, %p1024_p3 }
  0x44   : > { %p1027_p2 = pnand %p1026_p9, %p1020_p13 }
  0x46   : > { %1030 = shalt.err (!%p1027_p2)
}
  0x47   : > { %903 = dma.hbm_to_vmem [thread:$0]  (!%p1235_p11), %s1233_s27, 128, %s1239_s22, %s124_s28  }
  0x48   : > { %p1419_p5 = scmp.ne.s32.totalorder %s1414_s17, 0 }
  0x49   : > { %s1269_s20 = sand.u32 (!%p1419_p5), 1, %s1093_s10   ;;  %p1420_p0 = scmp.ne.s32.totalorder (!%p1419_p5), %s1412_s15, 0 }
  0x4a   : > { %143 = sbr.rel (%p1419_p5) target bundleno = 1365 (0x555), region = 28  ;;  %s808_s26 = sshll.u32 (!%p1419_p5), %s1269_s20, 3 }
  0x4b   : > { %s146_s19 = scalar_lea.sflag (!%p1419_p5), [#allocation3], %s1269_s20  ;;  %s149_s29 = scalar_lea.vmem (!%p1419_p5), [#allocation2], %s808_s26 }
  0x51   : > { %1076 = dma.done.wait (%p1420_p0), %s146_s19, 128  }
  0x52   : > { %1078 = vsyncadd (%p1420_p0), %s146_s19, 4294967168  ;;  %p1421_p11 = scmp.eq.s32.totalorder %s1154_s13, 0 }
  0x54   : > { %1080 = dma.done.wait (%p1421_p11), [#allocation6], 1024   ;;  %p1422_p1 = pmov %p1421_p11 }
  0x55   : > { %v1107_v0 = vmov 0   ;;  %v178_v1 = vld [vmem:[#allocation5 + $0x8] sm:$0xff]  ;;  %v180_v2 = vld [vmem:[#allocation5 + $0x18] sm:$0xff]  ;;  %v177_v3 = vld [vmem:[#allocation5] sm:$0xff]  ;;  %vm189_vm0 = vcmask 261120   ;;  %v1108_v15 = vmov 0.0   ;;  %v238_v36 = vlaneseq }
  0x56   : > { %1082 = vsyncadd (%p1422_p1), [#allocation6], 4294966272  ;;  %225 = vmatprep.mubr.bf16.mxu0 %v1107_v0  ;;  %v186_v4 = vpack.c.bf16 %v180_v2, %v178_v1  ;;  %v179_v5 = vld [vmem:[#allocation5 + $0x10] sm:$0xff]  ;;  %v182_v6 = vld [vmem:[#allocation5 + $0x28] sm:$0xff]  ;;  %840 = vmatprep.subr.bf16.mxu1 %v1108_v15  ;;  %vm1109_vm1 = vmmov 0   ;;  %vm310_vm2 = vcmask 1043456  }
  0x57   : > { %v184_v7 = vld [vmem:[#allocation5 + $0x38] sm:$0xff]  ;;  %v185_v8 = vpack.c.bf16 %v179_v5, %v177_v3  ;;  %v181_v10 = vld [vmem:[#allocation5 + $0x20] sm:$0xff]  ;;  %v183_v11 = vld [vmem:[#allocation5 + $0x30] sm:$0xff]  ;;  %842 = vmatprep.mubr.msk.bf16.mxu1 %vm1109_vm1, %v1108_v15  ;;  %s1110_s15 = smov 64   ;;  %s1111_s17 = smov 112   ;;  %vm246_vm3 = vcmask 130048  }
  0x58   : > { %v188_v9 = vpack.c.bf16 %v184_v7, %v182_v6  ;;  %193 = vmatprep.subr.bf16.mxu0 %v186_v4  ;;  %v187_v12 = vpack.c.bf16 %v183_v11, %v181_v10  ;;  %v175_v13 = vld [vmem:[%s149_s29] sm:$0xff]  ;;  %s1112_s27 = smov 48   ;;  %s1113_s22 = smov 32   ;;  %v239_v37 = vshrl.u32 %v238_v36, 7  ;;  %v241_v38 = vand.u32 127, %v238_v36 }
  0x59   : > { %194 = vmatpush1.bf16.msra.mxu0 %v185_v8  ;;  %v176_v14 = vpack.c.bf16 %v175_v13, %v175_v13  ;;  %s1114_s23 = smov 96   ;;  %s1115_s28 = smov 16   ;;  %vm294_vm5 = vcmask 64512   ;;  %vm703_vm6 = vcmask 392192   ;;  %vm705_vm7 = vcmask 523264  }
  0x5a   : > { %195 = vmatprep.subr.bf16.mxu0 %v188_v9  ;;  %s1116_s30 = smov 80   ;;  %vm242_vm4 = vcmp.gt.s32.totalorder %v241_v38, %v239_v37  ;;  %s821_s3 = sshll.u32 %s1154_s13, 7 }
  0x5b   : > { %s173_s4 = scalar_lea.vmem [#allocation7], %s808_s26  ;;  %s1362_s18 = scalar_lea.hbm %s1408_s2, %s821_s3 }
  0x5c   : > { %s721_s5 = sshll.u32 %s173_s4, 4  ;;  %s708_s13 = scalar_lea.sflag [#allocation4], %s1269_s20  ;;  %s1364_s5 = int_to_ptr.vmem [resolvable:$true] %s721_s5 }
  0x5d   : > { %196 = vmatpush1.bf16.msra.mxu0 %v187_v12  ;;  %s1031_s24 = scalar_lea.vmem %s1364_s5, 128  ;;  %s1117_s25 = smov [#allocation7]  }
  0x5e   : > { %846 = vmatprep.subr.bf16.mxu0 %v1108_v15  ;;  %p1032_p4 = scmp.ne.s32.totalorder %s1364_s5, %s1031_s24  ;;  %s1035_s26 = sshll.u32 %s1117_s25, 4  ;;  %s1036_s26 = int_to_ptr.vmem [resolvable:$false] %s1035_s26 }
  0x5f   : > { %s1037_s19 = scalar_lea.vmem %s1036_s26, 256  ;;  %p1038_p10 = scmp.lt.s32.totalorder %s1364_s5, %s1036_s26 }
  0x60   : > { %811 = vmatmul.mubr.msk.bf16.vlgmr.msra.gmra.mrb[0].mxu0 %vm189_vm0, %v176_v14  ;;  %p1033_p6 = pnand %p1032_p4, %p1224_p12  ;;  %p1039_p13 = scmp.lt.s32.totalorder %s1037_s19, %s1031_s24 }
  0x61   : > { %848 = vmatprep.mubr.msk.bf16.mxu0 %vm1109_vm1, %v1108_v15 }
  0x62   : > { %p1034_p8 = pneg %p1033_p6  ;;  %p1040_p3 = por %p1039_p13, %p1038_p10 }
  0x64   : > { %p1041_p7 = pnand %p1040_p3, %p1034_p8 }
 0x133   : > { %v227_v16 = vpop.f32.mrb[0].mxu0 }
 0x134   : > { %v234_v17 = vmul.f32 0.25, %v227_v16  ;;  %v236_v18 = vpack.c.bf16 %v227_v16, %v227_v16  ;;  %v229_v19 = vpop.f32.mrb[1].mxu0 }
 0x135   : > { %v1290_v20 = vpack.c.bf16 %v229_v19, %v229_v19  ;;  %v231_v21 = vpop.f32.mrb[2].mxu0 }
 0x136   : > { %v235_v22 = vpack.c.bf16 %v234_v17, %v234_v17  ;;  %244 = vrot.lane.b32.xlu0 %v236_v18, %s1110_s15  ;;  %v232_v23 = vpop.f32.mrb[3].mxu0 }
 0x137   : > { %v312_v24 = vsel %vm310_vm2, %v1290_v20, 0 }
 0x138   : > { %355 = vrot.lane.b32.xlu1 %v235_v22, %s1111_s17  ;;  %847 = vmatpush3.bf16.msra.mxu0 %v312_v24 }
 0x139   : > { %858 = vmatprep.subr.bf16.mxu0 %v1108_v15 }
 0x13a   : > { %357 = vrot.lane.b32.xlu0 %v236_v18, %s1112_s27 }
 0x13c   : > { %469 = vrot.lane.b32.xlu1 %v236_v18, %s1113_s22 }
 0x13e   : > { %467 = vrot.lane.b32.xlu0 %v235_v22, %s1114_s23 }
 0x140   : > { %580 = vrot.lane.b32.xlu1 %v236_v18, %s1115_s28 }
 0x142   : > { %578 = vrot.lane.b32.xlu0 %v235_v22, %s1116_s30 }
 0x1a8   : > { %v245_v25 = vpop.permute.xlu0 %244 }
 0x1a9   : > { %v251_v26 = vsel %vm246_vm3, %v245_v25, 0 }
 0x1aa   : > { %841 = vmatpush3.bf16.xpose.msra.mxu1 %v251_v26  ;;  %v356_v28 = vpop.permute.xlu1 %355 }
 0x1ab   : > { %852 = vmatprep.subr.bf16.mxu1 %v1108_v15 }
 0x1ac   : > { %v358_v27 = vpop.permute.xlu0 %357 }
 0x1ad   : > { %v363_v29 = vsel %vm246_vm3, %v358_v27, 0 }
 0x1ae   : > { %v470_v30 = vpop.permute.xlu1 %469 }
 0x1af   : > { %v475_v31 = vsel %vm246_vm3, %v470_v30, 0 }
 0x1b0   : > { %v468_v33 = vpop.permute.xlu0 %467 }
 0x1b1   : > { %843 = vmatmul.mubr.msk.bf16.vlgmr.msra.gmra.mrb[0].mxu1 %vm246_vm3, %v235_v22 }
 0x1b2   : > { %853 = vmatpush3.bf16.xpose.msra.mxu1 %v363_v29  ;;  %854 = vmatprep.mubr.msk.bf16.mxu1 %vm1109_vm1, %v1108_v15  ;;  %v581_v32 = vpop.permute.xlu1 %580 }
 0x1b3   : > { %864 = vmatprep.subr.bf16.mxu1 %v1108_v15  ;;  %v586_v34 = vsel %vm246_vm3, %v581_v32, 0 }
 0x1b4   : > { %v579_v35 = vpop.permute.xlu0 %578 }
 0x1b9   : > { %855 = vmatmul.mubr.msk.bf16.vlgmr.msra.gmra.mrb[4].mxu1 %vm246_vm3, %v356_v28 }
 0x1ba   : > { %865 = vmatpush3.bf16.xpose.msra.mxu1 %v475_v31  ;;  %866 = vmatprep.mubr.msk.bf16.mxu1 %vm1109_vm1, %v1108_v15 }
 0x1bb   : > { %876 = vmatprep.subr.bf16.mxu1 %v1108_v15 }
 0x1c1   : > { %867 = vmatmul.mubr.msk.bf16.vlgmr.msra.gmra.mrb[8].mxu1 %vm246_vm3, %v468_v33 }
 0x1c2   : > { %877 = vmatpush3.bf16.xpose.msra.mxu1 %v586_v34  ;;  %878 = vmatprep.mubr.msk.bf16.mxu1 %vm1109_vm1, %v1108_v15 }
 0x1c9   : > { %879 = vmatmul.mubr.msk.bf16.vlgmr.msra.gmra.mrb[12].mxu1 %vm246_vm3, %v579_v35 }
 0x284   : > { %v287_v39 = vpop.f32.mrb[0].mxu1 }
 0x285   : > { %v293_v40 = vsel %vm242_vm4, -1e+30, %v287_v39  ;;  %v844_v41 = vpop.f32.mrb[1].mxu1 }
 0x286   : > { %v290_v42 = vpop.f32.mrb[2].mxu1  ;;  %v295_v43 = vsel %vm294_vm5, %v293_v40, -inf }
 0x287   : > { %296 = vmax.xlane.f32.xlu1 %v295_v43  ;;  %v845_v44 = vpop.f32.mrb[3].mxu1 }
 0x28c   : > { %v399_v45 = vpop.f32.mrb[4].mxu1 }
 0x28d   : > { %v405_v46 = vsel %vm242_vm4, -1e+30, %v399_v45  ;;  %v856_v47 = vpop.f32.mrb[5].mxu1 }
 0x28e   : > { %v402_v48 = vpop.f32.mrb[6].mxu1  ;;  %v406_v49 = vsel %vm294_vm5, %v405_v46, -inf }
 0x28f   : > { %407 = vmax.xlane.f32.xlu0 %v406_v49  ;;  %v857_v50 = vpop.f32.mrb[7].mxu1 }
 0x294   : > { %v511_v51 = vpop.f32.mrb[8].mxu1 }
 0x295   : > { %v517_v52 = vsel %vm242_vm4, -1e+30, %v511_v51  ;;  %v868_v53 = vpop.f32.mrb[9].mxu1 }
 0x296   : > { %v514_v54 = vpop.f32.mrb[10].mxu1  ;;  %v518_v55 = vsel %vm294_vm5, %v517_v52, -inf }
 0x297   : > { %519 = vmax.xlane.f32.xlu0 %v518_v55  ;;  %v869_v56 = vpop.f32.mrb[11].mxu1 }
 0x29c   : > { %v622_v57 = vpop.f32.mrb[12].mxu1 }
 0x29d   : > { %v628_v58 = vsel %vm242_vm4, -1e+30, %v622_v57  ;;  %v880_v59 = vpop.f32.mrb[13].mxu1 }
 0x29e   : > { %v625_v60 = vpop.f32.mrb[14].mxu1  ;;  %v629_v61 = vsel %vm294_vm5, %v628_v58, -inf }
 0x29f   : > { %630 = vmax.xlane.f32.xlu1 %v629_v61  ;;  %v881_v62 = vpop.f32.mrb[15].mxu1 }
 0x314   : > { %v297_v63 = vpop.xlane.xlu1 %296 }
 0x315   : > { %v298_v0 = vsub.f32 %v293_v40, %v297_v63 }
 0x317   : > { %v299_v1 = vmul.f32 1.442695, %v298_v0 }
 0x319   : > { %957 = vpow2.f32 %v299_v1 }
 0x31c   : > { %v408_v2 = vpop.xlane.xlu0 %407 }
 0x31d   : > { %v409_v3 = vsub.f32 %v405_v46, %v408_v2 }
 0x31f   : > { %v410_v4 = vmul.f32 1.442695, %v409_v3 }
 0x321   : > { %959 = vpow2.f32 %v410_v4 }
 0x323   : > { %v958_v5 = vpop.eup %957 }
 0x324   : > { %v520_v6 = vpop.xlane.xlu0 %519  ;;  %v301_v7 = vsel %vm294_vm5, %v958_v5, 0.0 }
 0x325   : > { %v521_v8 = vsub.f32 %v517_v52, %v520_v6  ;;  %302 = vadd.xlane.f32.xlu0 %v301_v7 }
 0x327   : > { %v522_v9 = vmul.f32 1.442695, %v521_v8 }
 0x329   : > { %961 = vpow2.f32 %v522_v9 }
 0x32b   : > { %v960_v10 = vpop.eup %959 }
 0x32c   : > { %v412_v11 = vsel %vm294_vm5, %v960_v10, 0.0  ;;  %v631_v14 = vpop.xlane.xlu1 %630 }
 0x32d   : > { %413 = vadd.xlane.f32.xlu1 %v412_v11  ;;  %v632_v16 = vsub.f32 %v628_v58, %v631_v14 }
 0x32f   : > { %v633_v17 = vmul.f32 1.442695, %v632_v16 }
 0x331   : > { %963 = vpow2.f32 %v633_v17 }
 0x333   : > { %v962_v12 = vpop.eup %961 }
 0x334   : > { %v524_v13 = vsel %vm294_vm5, %v962_v12, 0.0 }
 0x335   : > { %525 = vadd.xlane.f32.xlu0 %v524_v13 }
 0x33b   : > { %v964_v18 = vpop.eup %963 }
 0x33c   : > { %v635_v19 = vsel %vm294_vm5, %v964_v18, 0.0 }
 0x33e   : > { %530 = vrot.lane.b32.xlu1 %v1290_v20, %s1114_s23 }
 0x34b   : > { %419 = vrot.lane.b32.xlu0 %v1290_v20, %s1111_s17 }
 0x362   : > { %636 = vadd.xlane.f32.xlu1 %v635_v19 }
 0x373   : > { %641 = vrot.lane.b32.xlu1 %v1290_v20, %s1116_s30 }
 0x3b2   : > { %v303_v21 = vpop.xlane.xlu0 %302 }
 0x3b3   : > { %965 = vrcp.f32 %v303_v21 }
 0x3ba   : > { %v414_v22 = vpop.xlane.xlu1 %413 }
 0x3bb   : > { %967 = vrcp.f32 %v414_v22 }
 0x3bd   : > { %v966_v23 = vpop.eup %965 }
 0x3be   : > { %v305_v24 = vmul.f32 %v966_v23, %v958_v5  ;;  %v531_v20 = vpop.permute.xlu1 %530 }
 0x3bf   : > { %v536_v32 = vsel %vm310_vm2, %v531_v20, 0 }
 0x3c0   : > { %v306_v25 = vpack.c.bf16 %v305_v24, %v305_v24 }
 0x3c2   : > { %v526_v26 = vpop.xlane.xlu0 %525  ;;  %849 = vmatmul.mubr.msk.bf16.vlgmr.msra.gmra.mrb[4].mxu0 %vm294_vm5, %v306_v25 }
 0x3c3   : > { %969 = vrcp.f32 %v526_v26  ;;  %860 = vmatprep.mubr.msk.bf16.mxu0 %vm1109_vm1, %v1108_v15 }
 0x3c5   : > { %v968_v27 = vpop.eup %967 }
 0x3c6   : > { %v416_v28 = vmul.f32 %v968_v27, %v960_v10  ;;  %v420_v29 = vpop.permute.xlu0 %419 }
 0x3c7   : > { %v425_v30 = vsel %vm310_vm2, %v420_v29, 0 }
 0x3c8   : > { %859 = vmatpush3.bf16.msra.mxu0 %v425_v30  ;;  %v417_v31 = vpack.c.bf16 %v416_v28, %v416_v28 }
 0x3c9   : > { %870 = vmatprep.subr.bf16.mxu0 %v1108_v15 }
 0x3cb   : > { %861 = vmatmul.mubr.msk.bf16.vlgmr.msra.gmra.mrb[8].mxu0 %vm294_vm5, %v417_v31 }
 0x3cc   : > { %871 = vmatpush3.bf16.msra.mxu0 %v536_v32  ;;  %872 = vmatprep.mubr.msk.bf16.mxu0 %vm1109_vm1, %v1108_v15 }
 0x3cd   : > { %v970_v33 = vpop.eup %969  ;;  %882 = vmatprep.subr.bf16.mxu0 %v1108_v15 }
 0x3ce   : > { %v528_v34 = vmul.f32 %v970_v33, %v962_v12 }
 0x3d0   : > { %v529_v35 = vpack.c.bf16 %v528_v34, %v528_v34 }
 0x3d3   : > { %873 = vmatmul.mubr.msk.bf16.vlgmr.msra.gmra.mrb[12].mxu0 %vm294_vm5, %v529_v35 }
 0x3d4   : > { %884 = vmatprep.mubr.msk.bf16.mxu0 %vm1109_vm1, %v1108_v15 }
 0x3ef   : > { %v637_v36 = vpop.xlane.xlu1 %636 }
 0x3f0   : > { %971 = vrcp.f32 %v637_v36 }
 0x3f3   : > { %v642_v37 = vpop.permute.xlu1 %641 }
 0x3f4   : > { %v647_v38 = vsel %vm310_vm2, %v642_v37, 0 }
 0x3f5   : > { %883 = vmatpush3.bf16.msra.mxu0 %v647_v38 }
 0x3fa   : > { %v972_v39 = vpop.eup %971 }
 0x3fb   : > { %v639_v40 = vmul.f32 %v972_v39, %v964_v18 }
 0x3fd   : > { %v640_v41 = vpack.c.bf16 %v639_v40, %v639_v40 }
 0x3ff   : > { %885 = vmatmul.mubr.msk.bf16.vlgmr.msra.gmra.mrb[16].mxu0 %vm294_vm5, %v640_v41 }
 0x495   : > { %v348_v42 = vpop.f32.mrb[4].mxu0 }
 0x496   : > { %v850_v43 = vpop.f32.mrb[5].mxu0 }
 0x497   : > { %v351_v44 = vpop.f32.mrb[6].mxu0 }
 0x498   : > { %v851_v45 = vpop.f32.mrb[7].mxu0 }
 0x49e   : > { %v461_v46 = vpop.f32.mrb[8].mxu0 }
 0x49f   : > { %690 = vrot.lane.b32.xlu0 %v461_v46, %s1115_s28  ;;  %v862_v15 = vpop.f32.mrb[9].mxu0 }
 0x4a0   : > { %v464_v47 = vpop.f32.mrb[10].mxu0 }
 0x4a1   : > { %v863_v48 = vpop.f32.mrb[11].mxu0 }
 0x4a6   : > { %v572_v49 = vpop.f32.mrb[12].mxu0 }
 0x4a7   : > { %694 = vrot.lane.b32.xlu1 %v572_v49, %s1113_s22  ;;  %v874_v50 = vpop.f32.mrb[13].mxu0 }
 0x4a8   : > { %v575_v51 = vpop.f32.mrb[14].mxu0 }
 0x4a9   : > { %v875_v52 = vpop.f32.mrb[15].mxu0 }
 0x4d2   : > { %v683_v53 = vpop.f32.mrb[16].mxu0 }
 0x4d3   : > { %698 = vrot.lane.b32.xlu0 %v683_v53, %s1112_s27  ;;  %v886_v54 = vpop.f32.mrb[17].mxu0 }
 0x4d4   : > { %v686_v55 = vpop.f32.mrb[18].mxu0 }
 0x4d5   : > { %v887_v56 = vpop.f32.mrb[19].mxu0 }
 0x511   : > { %v691_v57 = vpop.permute.xlu0 %690 }
 0x512   : > { %v701_v59 = vsel %vm246_vm3, %v348_v42, %v691_v57 }
 0x519   : > { %v695_v58 = vpop.permute.xlu1 %694 }
 0x51a   : > { %v702_v60 = vsel %vm189_vm0, %v701_v59, %v695_v58 }
 0x545   : > { %v699_v61 = vpop.permute.xlu0 %698 }
 0x546   : > { %v704_v62 = vsel %vm703_vm6, %v702_v60, %v699_v61 }
 0x547   : > { %706 = vst.msk [vmem:[%s173_s4] sm:$0xff] %vm705_vm7, %v704_v62 }
 0x548   : > { %1044 = shalt.err (!%p1041_p7)
}
 0x549   : > { %s1045_s20 = scalar_lea.hbm %s1362_s18, 128  ;;  %s1049_s17 = scalar_lea.hbm %s1408_s2, 256 }
 0x54a   : > { %p1046_p9 = scmp.ne.s32.totalorder %s1362_s18, %s1045_s20  ;;  %p1050_p0 = scmp.lt.u32.totalorder %s1362_s18, %s1408_s2 }
 0x54b   : > { %p1051_p11 = scmp.lt.u32.totalorder %s1049_s17, %s1045_s20  ;;  %p1053_p4 = scmp.lt.u32.totalorder %s1045_s20, %s1362_s18 }
 0x54c   : > { %p1047_p2 = pnand %p1046_p9, %p1224_p12 }
 0x54d   : > { %p1052_p1 = por %p1051_p11, %p1050_p0 }
 0x54e   : > { %p1048_p5 = pneg %p1047_p2 }
 0x54f   : > { %p1054_p6 = por %p1053_p4, %p1052_p1 }
 0x551   : > { %p1055_p8 = pnand %p1054_p6, %p1048_p5 }
 0x553   : > { %1058 = shalt.err (!%p1055_p8)
}
 0x554   : > { %894 = dma.vmem_to_hbm [thread:$0]  (%p1224_p12), %s1364_s5, 128, %s1362_s18, %s708_s13  }
 0x555 PF: > { %s733_s23 = sand.u32 1, %s1089_s9   ;;  %p1423_p10 = scmp.ne.s32.totalorder %s1413_s16, 0 }
 0x556   : > { %p1424_p13 = scmp.ge.s32.totalorder %s1101_s12, 2  ;;  %s734_s28 = scalar_lea.sflag [#allocation4], %s733_s23 }
 0x558   : > { %p905_p3 = pnand %p1424_p13, %p1423_p10 }
 0x55a   : > { %1084 = dma.done.wait (!%p905_p3), %s734_s28, 128  }
 0x55b   : > { %1086 = vsyncadd (!%p905_p3), %s734_s28, 4294967168  ;;  %p16_p7 = scmp.ge.s32.totalorder %s1189_s21, 4   ;;  %s1425_s9 = smov %s1093_s10 }
 0x55c   : > { %s1426_s10 = smov %s1097_s11  ;;  %s1427_s11 = smov %s1220_s8 }
 0x55d   : > { %s1428_s12 = smov %s1189_s21  ;;  %18 = sbr.rel (!%p16_p7) target bundleno = 6 (0x6), region = 77 }
 0x564   :  { %739 = vsyncpa [#allocation3], 1 }
 0x565   :  { %741 = vsyncpa [#allocation3 + $0x1], 1 }
 0x566   :  { %742 = vsyncpa [#allocation6], 1 }
 0x567   :  { %743 = vsyncpa [#allocation4], 1 }
 0x568   :  { %745 = vsyncpa [#allocation4 + $0x1], 1 }

</bundles_post_ra>
